<compile_context>
chip_gen: v6e
topology: v6e:2x2x1
jax: 0.10.0
libtpu: 0.0.40
codegen_flags: <defaults>
</compile_context>

<pallas_src>
import functools
import math

import jax
import jax.numpy as jnp
from jax.experimental import pallas as pl
from jax.experimental.pallas import tpu as pltpu


def _kld_sum_kernel(mu_ref, lv_ref, out_ref, acc_ref, *,
                    rows, block_rows, acc_rows, n_inner, n_blocks, need_mask):
    """Partial sum of (1 + logvar - mu^2 - exp(logvar)) over this core's row blocks.

    grid = (n_par, n_inner): the first axis splits row blocks across TensorCores
    (CORE_PARALLEL on v7x, size 1 elsewhere); the second axis is the reduction sweep.
    acc_ref is a small (acc_rows, cols) f32 VMEM accumulator fed by an in-register
    row-group reduction; out_ref is the (1, 1) SMEM block of the (n_par, 1) output.
    """
    j = pl.program_id(1)

    @pl.when(j == 0)
    def _init():
        acc_ref[...] = jnp.zeros_like(acc_ref)

    mu = mu_ref[...].astype(jnp.float32)
    lv = lv_ref[...].astype(jnp.float32)
    term = 1.0 + lv - mu * mu - jnp.exp(lv)          # (block_rows, cols) f32

    groups = block_rows // acc_rows

    def _reduce(t):
        # Row-group partial reduction: (groups, acc_rows, cols) sum over axis 0 is
        # layout-preserving (groups of 8 sublane rows) -> pure VALU adds, no XLU.
        if groups > 1:
            return t.reshape(groups, acc_rows, t.shape[-1]).sum(axis=0)
        return t

    if need_mask:
        # Logical (unclamped) row-block index of this step.
        g = pl.program_id(0) * n_inner + j

        @pl.when(g < n_blocks - 1)
        def _unmasked():
            # Interior blocks are always fully in-range: no mask work in steady state.
            acc_ref[...] += _reduce(term)

        @pl.when(g >= n_blocks - 1)
        def _masked():
            # Last real block (ragged tail) or a clamped duplicate fetch: discard rows
            # at or past `rows` with a select (NOT a multiply: exp(garbage) may be inf).
            row0 = g * block_rows
            row_ids = row0 + jax.lax.broadcasted_iota(jnp.int32, (block_rows, 1), 0)
            acc_ref[...] += _reduce(jnp.where(row_ids < rows, term, 0.0))
    else:
        acc_ref[...] += _reduce(term)

    @pl.when(j == n_inner - 1)
    def _final():
        out_ref[0, 0] = jnp.sum(acc_ref[...])


def _tensorcores_per_chip():
    """2 on v7x-class chips (2 TensorCores/chip), else 1. Best-effort detection."""
    try:
        kind = jax.devices()[0].device_kind.lower()
    except Exception:
        return 1
    return 2 if "v7" in kind else 1


def _is_v7x():
    try:
        return "v7" in jax.devices()[0].device_kind.lower()
    except Exception:
        return False


def kld_loss(mu, logvar, *, target_block_bytes=4 << 20):
    """Pallas implementation of KLDloss.forward(mu, logvar)."""
    assert mu.shape == logvar.shape, "mu and logvar must have identical shapes"
    B = logvar.shape[0]
    N = math.prod(logvar.shape)

    mu_flat = mu.reshape(-1)
    lv_flat = logvar.reshape(-1)

    # Lane-dense slab width: largest of these dividing N -> zero-copy reshape in the
    # common aligned case.  Otherwise pad only the sub-row tail with zeros (zeros
    # contribute exactly 0 to the KLD sum: 1 + 0 - 0 - exp(0) = 0).
    for c in (1024, 512, 256, 128):
        if N % c == 0:
            cols = c
            break
    else:
        cols = 128
    pad = (-N) % cols
    if pad:
        mu_flat = jnp.pad(mu_flat, (0, pad))
        lv_flat = jnp.pad(lv_flat, (0, pad))
    rows = (N + pad) // cols

    mu2 = mu_flat.reshape(rows, cols)
    lv2 = lv_flat.reshape(rows, cols)

    # Block sizing: ~target_block_bytes per input per grid step, sublane-aligned for
    # the input dtype (8 rows for 4B, 16 for 2B, 32 for 1B dtypes).
    itemsize = jnp.dtype(mu2.dtype).itemsize
    sub = {4: 8, 2: 16, 1: 32}.get(itemsize, 8)
    block_rows_target = max(sub, (target_block_bytes // (cols * itemsize)) // sub * sub)

    if rows <= block_rows_target:
        block_rows = rows            # single full-array block (always a legal shape)
        n_blocks = 1
    else:
        block_rows = block_rows_target
        n_blocks = pl.cdiv(rows, block_rows)

    # Accumulator is vreg-sized (8 rows) whenever the block is sublane-aligned; the
    # odd-rows case only occurs on the single-step small-array path.
    acc_rows = 8 if block_rows % 8 == 0 else block_rows

    # Split row blocks across TensorCores only on 2-TC chips (v7x); on single-TC
    # v5e/v6e the split would just serialize and add duplicate-fetch/mask overhead.
    n_tc = _tensorcores_per_chip()
    n_par = n_tc if (n_tc > 1 and n_blocks >= n_tc) else 1
    n_inner = pl.cdiv(n_blocks, n_par)
    need_mask = (n_par * n_inner * block_rows != rows)

    if n_par * n_inner == n_blocks:
        def in_map(p, j):
            return (p * n_inner + j, 0)
    else:
        def in_map(p, j):
            # Clamp so the (possibly empty) tail of the parallel split re-fetches the
            # last real block; its rows are masked out in the kernel.
            return (jnp.minimum(p * n_inner + j, n_blocks - 1), 0)

    kernel = functools.partial(
        _kld_sum_kernel,
        rows=rows, block_rows=block_rows, acc_rows=acc_rows,
        n_inner=n_inner, n_blocks=n_blocks, need_mask=need_mask)

    # VMEM budget: 2 inputs x 2 buffers x block + accumulator + headroom, capped
    # generation-aware (v7x: 64 MiB physical VMEM/TC; v5e/v6e: 128 MiB).
    block_bytes = block_rows * cols * itemsize
    acc_bytes = acc_rows * cols * 4
    vmem_needed = 4 * block_bytes + acc_bytes + (2 << 20)
    vmem_cap = (40 << 20) if _is_v7x() else (96 << 20)
    vmem_limit = int(min(max(32 << 20, vmem_needed), vmem_cap))

    cost = pl.CostEstimate(
        flops=5 * N,
        transcendentals=N,
        bytes_accessed=2 * N * itemsize + 4 * n_par,
    )

    def _call(dim_semantics):
        return pl.pallas_call(
            kernel,
            out_shape=jax.ShapeDtypeStruct((n_par, 1), jnp.float32),
            grid_spec=pltpu.PrefetchScalarGridSpec(
                num_scalar_prefetch=0,
                grid=(n_par, n_inner),
                in_specs=[
                    pl.BlockSpec((block_rows, cols), in_map),
                    pl.BlockSpec((block_rows, cols), in_map),
                ],
                out_specs=pl.BlockSpec((1, 1), lambda p, j: (p, 0),
                                       memory_space=pltpu.SMEM),
                scratch_shapes=[pltpu.VMEM((acc_rows, cols), jnp.float32)],
            ),
            compiler_params=pltpu.CompilerParams(
                dimension_semantics=dim_semantics,
                vmem_limit_bytes=vmem_limit,
            ),
            cost_estimate=cost,
        )(mu2, lv2)

    if n_par == 2:
        # Make the split land on both TensorCores (CORE_PARALLEL), falling back to
        # plain "parallel" if the backend rejects core-parallel semantics.
        core_par = getattr(pltpu, "CORE_PARALLEL", "parallel")
        arb = getattr(pltpu, "ARBITRARY", "arbitrary")
        sem_options = [(core_par, arb), ("parallel", "arbitrary")]
    else:
        sem_options = [("arbitrary", "arbitrary")]

    partials = None
    last_err = None
    for sem in sem_options:
        try:
            partials = _call(sem)
            break
        except Exception as err:   # pragma: no cover - fallback path
            last_err = err
    if partials is None:
        raise last_err

    return (-0.5 / B) * jnp.sum(partials)


def kld_loss_ref(mu, logvar):
    """Plain-JAX reference matching the PyTorch forward exactly."""
    B = logvar.shape[0]
    mu = mu.astype(jnp.float32)
    lv = logvar.astype(jnp.float32)
    return -0.5 * jnp.sum(1.0 + lv - mu * mu - jnp.exp(lv)) / B


if __name__ == "__main__":
    key = jax.random.PRNGKey(0)
    k1, k2, k3, k4, k5, k6 = jax.random.split(key, 6)

    # 1) Small VAE-latent-style case (B=2, D=32): single-block path.
    mu = jax.random.normal(k1, (2, 32), dtype=jnp.float32)
    logvar = jax.random.normal(k2, (2, 32), dtype=jnp.float32) * 0.5
    out = jax.block_until_ready(kld_loss(mu, logvar))
    ref = jax.block_until_ready(kld_loss_ref(mu, logvar))
    assert jnp.allclose(out, ref, rtol=1e-5, atol=1e-5), (out, ref)

    # 2) Aligned multi-block path (no masking), tiny block budget to force >1 step.
    mu2 = jax.random.normal(k3, (2, 8192), dtype=jnp.float32)
    lv2 = jax.random.normal(k4, (2, 8192), dtype=jnp.float32) * 0.5
    out2 = jax.block_until_ready(kld_loss(mu2, lv2, target_block_bytes=32768))
    ref2 = jax.block_until_ready(kld_loss_ref(mu2, lv2))
    assert jnp.allclose(out2, ref2, rtol=1e-4, atol=1e-4), (out2, ref2)

    # 3) Unaligned multi-block case: exercises the ragged-block masked path.
    mu3 = jax.random.normal(k5, (4, 3, 37, 29), dtype=jnp.float32)
    lv3 = jax.random.normal(k6, (4, 3, 37, 29), dtype=jnp.float32) * 0.5
    out3 = jax.block_until_ready(kld_loss(mu3, lv3, target_block_bytes=8192))
    ref3 = jax.block_until_ready(kld_loss_ref(mu3, lv3))
    assert jnp.allclose(out3, ref3, rtol=1e-4, atol=1e-4), (out3, ref3)

    # 4) bf16 inputs (2-byte sublane alignment), f32 accumulation in-kernel.
    mu4 = jax.random.normal(k1, (2, 4, 16, 16), dtype=jnp.bfloat16)
    lv4 = (jax.random.normal(k2, (2, 4, 16, 16), dtype=jnp.float32) * 0.5).astype(jnp.bfloat16)
    out4 = jax.block_until_ready(kld_loss(mu4, lv4))
    ref4 = jax.block_until_ready(kld_loss_ref(mu4, lv4))
    assert jnp.allclose(out4, ref4, rtol=1e-4, atol=1e-4), (out4, ref4)

    print("KERNEL_OK")
</pallas_src>

<mosaic_0001>
module attributes {stable_mosaic.version = 11 : i64} {
  func.func @_kld_sum_kernel(%arg0: i32, %arg1: i32, %arg2: memref<1x128xf32, #tpu.memory_space<vmem>>, %arg3: memref<1x128xf32, #tpu.memory_space<vmem>>, %arg4: memref<1x1xf32, #tpu.memory_space<smem>>, %arg5: memref<1x128xf32, #tpu.memory_space<vmem>>) attributes {dimension_semantics = [#tpu.dimension_semantics<arbitrary>, #tpu.dimension_semantics<arbitrary>], iteration_bounds = array<i64: 1, 1>, scalar_prefetch = 0 : i64, scratch_operands = 1 : i64, tpu.core_type = #tpu.core_type<tc>, window_params = [{transform_indices = @transform_0, window_bounds = array<i64: 1, 128>}, {transform_indices = @transform_1, window_bounds = array<i64: 1, 128>}, {transform_indices = @transform_2, window_bounds = array<i64: 1, 1>}]} {
    %c0_i32 = arith.constant 0 : i32
    %0 = arith.cmpi eq, %arg1, %c0_i32 : i32
    %1 = arith.extui %0 : i1 to i32
    %c0_i32_0 = arith.constant 0 : i32
    %2 = arith.cmpi ne, %1, %c0_i32_0 : i32
    scf.if %2 {
      %cst_10 = arith.constant 0.000000e+00 : f32
      %17 = vector.broadcast %cst_10 : f32 to vector<1x128xf32>
      %c0_11 = arith.constant 0 : index
      %c0_12 = arith.constant 0 : index
      %18 = vector.load %arg5[%c0_11, %c0_12] : memref<1x128xf32, #tpu.memory_space<vmem>>, vector<1x128xf32>
      tpu.vector_store %arg5[%c0_11, %c0_12], %17 {strides = array<i32>} : memref<1x128xf32, #tpu.memory_space<vmem>>, vector<1x128xf32>,
    } else {
    }
    %c0 = arith.constant 0 : index
    %c0_1 = arith.constant 0 : index
    %3 = vector.load %arg2[%c0, %c0_1] : memref<1x128xf32, #tpu.memory_space<vmem>>, vector<1x128xf32>
    %c0_2 = arith.constant 0 : index
    %c0_3 = arith.constant 0 : index
    %4 = vector.load %arg3[%c0_2, %c0_3] : memref<1x128xf32, #tpu.memory_space<vmem>>, vector<1x128xf32>
    %cst = arith.constant 1.000000e+00 : f32
    %5 = vector.broadcast %cst : f32 to vector<1x128xf32>
    %6 = arith.addf %5, %4 : vector<1x128xf32>
    %7 = arith.mulf %3, %3 : vector<1x128xf32>
    %8 = arith.subf %6, %7 : vector<1x128xf32>
    %9 = math.exp %4 : vector<1x128xf32>
    %10 = arith.subf %8, %9 : vector<1x128xf32>
    %c0_4 = arith.constant 0 : index
    %c0_5 = arith.constant 0 : index
    %11 = vector.load %arg5[%c0_4, %c0_5] : memref<1x128xf32, #tpu.memory_space<vmem>>, vector<1x128xf32>
    %12 = arith.addf %11, %10 : vector<1x128xf32>
    %c0_6 = arith.constant 0 : index
    %c0_7 = arith.constant 0 : index
    %13 = vector.load %arg5[%c0_6, %c0_7] : memref<1x128xf32, #tpu.memory_space<vmem>>, vector<1x128xf32>
    tpu.vector_store %arg5[%c0_6, %c0_7], %12 {strides = array<i32>} : memref<1x128xf32, #tpu.memory_space<vmem>>, vector<1x128xf32>,
    %c0_i32_8 = arith.constant 0 : i32
    %14 = arith.cmpi eq, %arg1, %c0_i32_8 : i32
    %15 = arith.extui %14 : i1 to i32
    %c0_i32_9 = arith.constant 0 : i32
    %16 = arith.cmpi ne, %15, %c0_i32_9 : i32
    scf.if %16 {
      %c0_10 = arith.constant 0 : index
      %c0_11 = arith.constant 0 : index
      %17 = vector.load %arg5[%c0_10, %c0_11] : memref<1x128xf32, #tpu.memory_space<vmem>>, vector<1x128xf32>
      %18 = vector.shape_cast %17 : vector<1x128xf32> to vector<1x1x128xf32>
      %cst_12 = arith.constant dense<0.000000e+00> : vector<1xf32>
      %19 = vector.multi_reduction <add>, %18, %cst_12 [1, 2] : vector<1x1x128xf32> to vector<1xf32>
      %20 = vector.shape_cast %19 : vector<1xf32> to vector<1x1x1xf32>
      %21 = vector.extract %20[0, 0, 0] : f32 from vector<1x1x1xf32>
      %c0_13 = arith.constant 0 : index
      %c0_14 = arith.constant 0 : index
      %22 = memref.load %arg4[%c0_13, %c0_14] : memref<1x1xf32, #tpu.memory_space<smem>>
      memref.store %21, %arg4[%c0_13, %c0_14] : memref<1x1xf32, #tpu.memory_space<smem>>
    } else {
    }
    return
  }
  func.func @transform_0(%arg0: i32, %arg1: i32) -> (i32, i32) {
    %c1_i32 = arith.constant 1 : i32
    %0 = arith.muli %arg0, %c1_i32 : i32
    %1 = arith.addi %0, %arg1 : i32
    %c0_i32 = arith.constant 0 : i32
    %c0_i32_0 = arith.constant 0 : i32
    return %1, %c0_i32 : i32, i32
  }
  func.func @transform_1(%arg0: i32, %arg1: i32) -> (i32, i32) {
    %c1_i32 = arith.constant 1 : i32
    %0 = arith.muli %arg0, %c1_i32 : i32
    %1 = arith.addi %0, %arg1 : i32
    %c0_i32 = arith.constant 0 : i32
    %c0_i32_0 = arith.constant 0 : i32
    return %1, %c0_i32 : i32, i32
  }
  func.func @transform_2(%arg0: i32, %arg1: i32) -> (i32, i32) {
    %c0_i32 = arith.constant 0 : i32
    %c0_i32_0 = arith.constant 0 : i32
    return %arg0, %c0_i32 : i32, i32
  }
}

</mosaic_0001>

<bundles_post_ra>
// kernel: tpu_custom_call.1
= control target key start
LH: loop header
LB: loop body
LE: loop exit
PB: predicated region body
PF: predicated region fallthrough
CT: control target
= control target key end

     0   :  { %7 = vsyncpa [#allocation4], 0  ;;  %s158_s0 = inlined_call_operand.hbm [shape: f32[1,128], index: 0, kind: input, shape index: {}]   ;;  %s159_s1 = inlined_call_operand.vmem [shape: f32[1,128], index: 1, kind: input, shape index: {}]   ;;  %s160_s2 = inlined_call_operand.hbm [shape: f32[1,1], index: 2, kind: output, shape index: {}]  }
   0x1   :  { %8 = vsyncpa [#allocation5], 0  ;;  %s131_s9 = smov [#allocation3]  }
   0x2   :  { %s18_s10 = sshll.u32 %s131_s9, 4  ;;  %s19_s10 = int_to_ptr.vmem [resolvable:$true] %s18_s10 }
   0x3   :  { %s107_s11 = scalar_lea.vmem %s19_s10, 16  ;;  %s111_s12 = scalar_lea.vmem %s19_s10, 32 }
   0x4   :  { %p108_p0 = scmp.ne.s32.totalorder %s19_s10, %s107_s11  ;;  %p112_p1 = scmp.lt.s32.totalorder %s19_s10, %s19_s10 }
   0x5   :  { %p113_p2 = scmp.lt.s32.totalorder %s111_s12, %s107_s11 }
   0x7   :  { %p114_p3 = por %p113_p2, %p112_p1 }
   0x9   :  { %p115_p4 = pnand %p114_p3, %p108_p0 }
   0xb   :  { %118 = shalt.err (!%p115_p4)
}
   0xc   :  { %21 = dma.hbm_to_vmem [thread:$0]  %s158_s0, 16, %s19_s10, [#allocation4]  }
   0xd   :  { %127 = dma.done.wait [#allocation4], 16  }
   0xe   :  { %128 = vsyncadd [#allocation4], 4294967280  ;;  %v132_v0 = vmov 0.0   ;;  %v48_v1 = vld [vmem:[%s159_s1] sm:$0x1]  ;;  %vm62_vm0 = vcmask 1040384  }
   0xf   :  { %46 = vst [vmem:[#allocation2] sm:$0x1] %v132_v0  ;;  %v52_v2 = vmul.f32 1.442695, %v48_v1  ;;  %v47_v3 = vld [vmem:[#allocation3] sm:$0x1] }
  0x10   :  { %v49_v4 = vadd.f32 1.0, %v48_v1  ;;  %v50_v5 = vmul.f32 %v47_v3, %v47_v3  ;;  %s133_s1 = smov [#allocation6]  }
  0x11   :  { %97 = vpow2.f32 %v52_v2 }
  0x12   :  { %v51_v6 = vsub.f32 %v49_v4, %v50_v5 }
  0x16   :  { %v55_v8 = vld [vmem:[#allocation2] sm:$0x1] }
  0x1e   :  { %v98_v7 = vpop.eup %97 }
  0x1f   :  { %v54_v9 = vsub.f32 %v51_v6, %v98_v7 }
  0x21   :  { %v56_v10 = vadd.f32 %v55_v8, %v54_v9 }
  0x23   :  { %57 = vst [vmem:[#allocation2] sm:$0x1] %v56_v10 }
  0x2a   :  { %v61_v11 = vld [vmem:[#allocation2] sm:$0x1] }
  0x2b   :  { %v63_v12 = vsel %vm62_vm0, %v61_v11, 0.0 }
  0x2c   :  { %64 = vadd.xlane.f32.xlu0 %v63_v12 }
  0xb5   :  { %v65_v13 = vpop.xlane.xlu0 %64 }
  0xb6   :  { %v66_v14 = vrot.slane %v65_v13, 4 }
  0xb8   :  { %v67_v15 = vadd.f32 %v66_v14, %v65_v13 }
  0xba   :  { %v68_v16 = vrot.slane %v67_v15, 2 }
  0xbc   :  { %v69_v17 = vadd.f32 %v68_v16, %v67_v15 }
  0xbe   :  { %v70_v18 = vrot.slane %v69_v17, 1 }
  0xc0   :  { %v71_v19 = vadd.f32 %v70_v18, %v69_v17 }
  0xc2   :  { %92 = vpush %v71_v19 }
  0xf3   :  { %s93_s0 = spop %92 }
  0xf4   :  { %74 = sst [smem:[#allocation6]] %s93_s0 }
  0xf5   :  { %82 = dma.smem_to_hbm %s133_s1, 16, %s160_s2, [#allocation5]  }
  0xf6   :  { %129 = dma.done.wait [#allocation5], 16  }
  0xf7   :  { %130 = vsyncadd [#allocation5], 4294967280 }
  0xf8   :  { %86 = sfence }
  0xf9   :  { %87 = vsyncpa [#allocation4], 1 }
  0xfa   :  { %88 = vsyncpa [#allocation5], 1 }

</bundles_post_ra>
